<compile_context>
chip_gen: v7x
topology: tpu7x:2x2x1
jax: 0.10.0
libtpu: 0.0.40
codegen_flags: <defaults>
</compile_context>

<pallas_src>
import functools
from typing import NamedTuple, Optional

import jax
import jax.numpy as jnp
from jax.experimental import pallas as pl
from jax.experimental.pallas import tpu as pltpu


def _round_up(x, m):
    return (x + m - 1) // m * m


def _select_tiling():
    """Generation-aware (tm_hint, th_hint, vmem_limit_bytes)."""
    try:
        vmem_cap = int(pltpu.get_tpu_info().vmem_capacity_bytes)
    except Exception:
        vmem_cap = 64 * 1024 * 1024  # conservative (v7x-sized)
    if vmem_cap >= 96 * 1024 * 1024:
        # v5e / v6e: 128 MiB VMEM -> big row tile, raise the scoped limit.
        return 512, 512, 100 * 1024 * 1024
    # v7x: 64 MiB VMEM per TensorCore -> keep the tile moderate.
    return 384, 512, 56 * 1024 * 1024


def _gate_dtype(compute_dtype):
    """bf16 gating on chips with bf16 VPU/EUP (v6e/v7x); f32 otherwise."""
    try:
        kind = jax.devices()[0].device_kind.lower()
    except Exception:
        return jnp.float32
    if any(tag in kind for tag in ("v2", "v3", "v4", "v5")):
        return jnp.float32
    return compute_dtype


class FFNParams(NamedTuple):
    """Pre-padded / pre-packed weights (build once with prepare_ffn_weights)."""
    w13: jax.Array   # (Dp, n_h * 2 * th), per-h-tile interleaved [w1 | w3]
    w2: jax.Array    # (Hp, Dp)
    D: int
    H: int
    Dp: int
    Hp: int
    th: int


def prepare_ffn_weights(w1, w3, w2, *, th_hint=512, compute_dtype=jnp.bfloat16):
    """Cast + pad + tile-interleave the FFN weights ONCE (hoisted out of forward).

    w1, w3: (D, H) up-projection weights (already transposed vs. nn.Linear).
    w2:     (H, D) down-projection weight.
    """
    D, H = w1.shape
    assert w3.shape == (D, H) and w2.shape == (H, D)
    Dp = _round_up(D, 128)
    n_h = pl.cdiv(H, th_hint)
    th = _round_up(pl.cdiv(H, n_h), 128)
    Hp = n_h * th

    cd = compute_dtype
    w1p = jnp.pad(w1.astype(cd), ((0, Dp - D), (0, Hp - H)))
    w3p = jnp.pad(w3.astype(cd), ((0, Dp - D), (0, Hp - H)))
    # Interleave per h-tile so a single (Dp, 2*th) block carries both projections.
    w13 = jnp.concatenate(
        [w1p.reshape(Dp, n_h, th), w3p.reshape(Dp, n_h, th)], axis=2
    ).reshape(Dp, n_h * 2 * th)
    w2p = jnp.pad(w2.astype(cd), ((0, Hp - H), (0, Dp - D)))
    return FFNParams(w13, w2p, D, H, Dp, Hp, th)


def _ffn_kernel(x_ref, w13_ref, w2_ref, o_ref, acc_ref, *, th, gate_dtype):
    """grid = (row_tiles, h_tiles); h (down-projection reduction) is last."""
    h = pl.program_id(1)

    @pl.when(h == 0)
    def _():
        acc_ref[...] = jnp.zeros_like(acc_ref)

    x = x_ref[...]                                                     # (tm, Dp)
    # Single fused up-projection: (tm, Dp) @ (Dp, 2*th) -> (tm, 2*th) f32.
    h13 = jnp.dot(x, w13_ref[...], preferred_element_type=jnp.float32)
    h1 = h13[:, :th]
    h3 = h13[:, th:]
    if gate_dtype != jnp.float32:
        h1 = h1.astype(gate_dtype)
        h3 = h3.astype(gate_dtype)
    # SwiGLU gate, kept in values (no VMEM scratch round-trip).
    gated = (h1 * jax.nn.sigmoid(h1) * h3).astype(w2_ref.dtype)        # (tm, th)

    acc_ref[...] += jnp.dot(gated, w2_ref[...],
                            preferred_element_type=jnp.float32)        # (tm, Dp)

    @pl.when(h == pl.num_programs(1) - 1)
    def _():
        o_ref[...] = acc_ref[...].astype(o_ref.dtype)


def feed_forward(x, params: FFNParams, *,
                 tm_hint: Optional[int] = None,
                 compute_dtype=jnp.bfloat16,
                 out_dtype=None,
                 dropout_p: float = 0.0):
    """x: (B, S, D). Returns (B, S, D) in `out_dtype` (default: compute_dtype)."""
    if dropout_p != 0.0:
        # TODO(synk): training-mode dropout (PRNG mask) is not implemented.
        raise NotImplementedError("Only inference-mode (dropout_p == 0) supported.")

    B, S, D = x.shape
    assert D == params.D, f"embedding dim mismatch: {D} vs {params.D}"
    M = B * S
    Dp, Hp, th = params.Dp, params.Hp, params.th

    cfg_tm, _, vmem_limit = _select_tiling()
    tm_hint = tm_hint or cfg_tm

    # Balanced row tiling: minimal padding, single tile when M is small.
    n_rows = pl.cdiv(M, tm_hint)
    tm = _round_up(pl.cdiv(M, n_rows), 16)
    Mp = n_rows * tm

    cd = compute_dtype
    out_dtype = out_dtype or cd
    gate_dtype = _gate_dtype(cd)

    x2d = x.reshape(M, D)
    if x2d.dtype != cd:
        x2d = x2d.astype(cd)
    if (Mp, Dp) != (M, D):
        x2d = jnp.pad(x2d, ((0, Mp - M), (0, Dp - D)))

    grid = (Mp // tm, Hp // th)
    kernel = functools.partial(_ffn_kernel, th=th, gate_dtype=gate_dtype)

    out2d = pl.pallas_call(
        kernel,
        out_shape=jax.ShapeDtypeStruct((Mp, Dp), out_dtype),
        grid_spec=pltpu.PrefetchScalarGridSpec(
            num_scalar_prefetch=0,
            grid=grid,
            in_specs=[
                pl.BlockSpec((tm, Dp), lambda i, h: (i, 0)),       # x rows (resident over h)
                pl.BlockSpec((Dp, 2 * th), lambda i, h: (0, h)),   # fused [w1|w3] column tile
                pl.BlockSpec((th, Dp), lambda i, h: (h, 0)),       # w2 row tile
            ],
            out_specs=pl.BlockSpec((tm, Dp), lambda i, h: (i, 0)),  # resident over h
            scratch_shapes=[
                pltpu.VMEM((tm, Dp), jnp.float32),                  # f32 output accumulator
            ],
        ),
        compiler_params=pltpu.CompilerParams(
            dimension_semantics=("parallel", "arbitrary"),
            vmem_limit_bytes=vmem_limit,
        ),
    )(x2d, params.w13, params.w2)

    return out2d[:M, :D].reshape(B, S, D)


def _reference(x, w1, w3, w2):
    h = jax.nn.silu(x @ w1) * (x @ w3)
    return h @ w2


if __name__ == "__main__":
    # LMConfig-equivalent small shapes:
    #   embedding_dim = 32, ffn_hidden_dim = None, multiple_of = 64
    #   -> hidden = int(2 * (4*32) / 3) = 85 -> rounded up to 128
    B, S, D = 2, 8, 32
    multiple_of = 64
    hidden = int(2 * (4 * D) / 3)
    H = multiple_of * ((hidden + multiple_of - 1) // multiple_of)   # 128

    key = jax.random.PRNGKey(0)
    kx, k1, k2, k3 = jax.random.split(key, 4)

    x = jax.random.normal(kx, (B, S, D), dtype=jnp.float32)
    # Weights stored transposed relative to PyTorch nn.Linear (matmul layout).
    w1 = jax.random.normal(k1, (D, H), dtype=jnp.float32) * (1.0 / jnp.sqrt(D))
    w3 = jax.random.normal(k3, (D, H), dtype=jnp.float32) * (1.0 / jnp.sqrt(D))
    w2 = jax.random.normal(k2, (H, D), dtype=jnp.float32) * (1.0 / jnp.sqrt(H))

    # Weight prep (cast/pad/pack) is done ONCE, outside the forward pass.
    params = prepare_ffn_weights(w1, w3, w2)

    out = feed_forward(x, params)           # bf16 output by default
    out = jax.block_until_ready(out)
    assert out.shape == (B, S, D)

    ref = _reference(x, w1, w3, w2)
    # bf16 compute / bf16 output with f32 accumulation: loose relative tolerance,
    # normalized to the output magnitude. Callers needing f32-accurate FFN output
    # should pass compute_dtype=jnp.float32 / out_dtype=jnp.float32.
    out_f32 = out.astype(jnp.float32)
    rel_err = float(jnp.max(jnp.abs(out_f32 - ref)) / (jnp.max(jnp.abs(ref)) + 1e-6))
    assert rel_err < 5e-2, f"mismatch vs reference (rel_err={rel_err})"

    print("KERNEL_OK")
</pallas_src>

<mosaic_0001>
module attributes {stable_mosaic.version = 11 : i64} {
  func.func @_ffn_kernel(%arg0: i32, %arg1: i32, %arg2: memref<16x128xbf16, #tpu.memory_space<vmem>>, %arg3: memref<128x256xbf16, #tpu.memory_space<vmem>>, %arg4: memref<128x128xbf16, #tpu.memory_space<vmem>>, %arg5: memref<16x128xbf16, #tpu.memory_space<vmem>>, %arg6: memref<16x128xf32, #tpu.memory_space<vmem>>) attributes {dimension_semantics = [#tpu.dimension_semantics<parallel>, #tpu.dimension_semantics<arbitrary>], iteration_bounds = array<i64: 1, 1>, scalar_prefetch = 0 : i64, scratch_operands = 1 : i64, tpu.core_type = #tpu.core_type<tc>, window_params = [{transform_indices = @transform_0, window_bounds = array<i64: 16, 128>}, {transform_indices = @transform_1, window_bounds = array<i64: 128, 256>}, {transform_indices = @transform_2, window_bounds = array<i64: 128, 128>}, {transform_indices = @transform_3, window_bounds = array<i64: 16, 128>}]} {
    %c0_i32 = arith.constant 0 : i32
    %0 = arith.cmpi eq, %arg1, %c0_i32 : i32
    %1 = arith.extui %0 : i1 to i32
    %c0_i32_0 = arith.constant 0 : i32
    %2 = arith.cmpi ne, %1, %c0_i32_0 : i32
    scf.if %2 {
      %cst_14 = arith.constant 0.000000e+00 : f32
      %25 = vector.broadcast %cst_14 : f32 to vector<16x128xf32>
      %c0_15 = arith.constant 0 : index
      %c0_16 = arith.constant 0 : index
      %26 = vector.load %arg6[%c0_15, %c0_16] : memref<16x128xf32, #tpu.memory_space<vmem>>, vector<16x128xf32>
      tpu.vector_store %arg6[%c0_15, %c0_16], %25 {strides = array<i32>} : memref<16x128xf32, #tpu.memory_space<vmem>>, vector<16x128xf32>,
    } else {
    }
    %c0 = arith.constant 0 : index
    %c0_1 = arith.constant 0 : index
    %3 = vector.load %arg2[%c0, %c0_1] : memref<16x128xbf16, #tpu.memory_space<vmem>>, vector<16x128xbf16>
    %c0_2 = arith.constant 0 : index
    %c0_3 = arith.constant 0 : index
    %4 = vector.load %arg3[%c0_2, %c0_3] : memref<128x256xbf16, #tpu.memory_space<vmem>>, vector<128x256xbf16>
    %cst = arith.constant dense<0.000000e+00> : vector<16x256xf32>
    %5 = tpu.matmul %3, %4, %cst {dimension_numbers = #tpu.dot_dimension_numbers<[1], [0], [0], [1], [0, 0, 1, 1], [], []>} : vector<16x128xbf16>, vector<128x256xbf16>, vector<16x256xf32> -> vector<16x256xf32>
    %6 = vector.extract_strided_slice %5 {offsets = [0, 0], sizes = [16, 128], strides = [1, 1]} : vector<16x256xf32> to vector<16x128xf32>
    %7 = vector.extract_strided_slice %5 {offsets = [0, 128], sizes = [16, 128], strides = [1, 1]} : vector<16x256xf32> to vector<16x128xf32>
    %8 = arith.truncf %6 : vector<16x128xf32> to vector<16x128xbf16>
    %9 = arith.truncf %7 : vector<16x128xf32> to vector<16x128xbf16>
    %10 = arith.negf %8 : vector<16x128xbf16>
    %11 = math.exp %10 : vector<16x128xbf16>
    %cst_4 = arith.constant 1.000000e+00 : bf16
    %12 = vector.broadcast %cst_4 : bf16 to vector<16x128xbf16>
    %13 = arith.addf %12, %11 : vector<16x128xbf16>
    %14 = arith.divf %12, %13 : vector<16x128xbf16>
    %15 = arith.mulf %8, %14 : vector<16x128xbf16>
    %16 = arith.mulf %15, %9 : vector<16x128xbf16>
    %c0_5 = arith.constant 0 : index
    %c0_6 = arith.constant 0 : index
    %17 = vector.load %arg6[%c0_5, %c0_6] : memref<16x128xf32, #tpu.memory_space<vmem>>, vector<16x128xf32>
    %c0_7 = arith.constant 0 : index
    %c0_8 = arith.constant 0 : index
    %18 = vector.load %arg4[%c0_7, %c0_8] : memref<128x128xbf16, #tpu.memory_space<vmem>>, vector<128x128xbf16>
    %cst_9 = arith.constant dense<0.000000e+00> : vector<16x128xf32>
    %19 = tpu.matmul %16, %18, %cst_9 {dimension_numbers = #tpu.dot_dimension_numbers<[1], [0], [0], [1], [0, 0, 1, 1], [], []>} : vector<16x128xbf16>, vector<128x128xbf16>, vector<16x128xf32> -> vector<16x128xf32>
    %20 = arith.addf %17, %19 : vector<16x128xf32>
    %c0_10 = arith.constant 0 : index
    %c0_11 = arith.constant 0 : index
    %21 = vector.load %arg6[%c0_10, %c0_11] : memref<16x128xf32, #tpu.memory_space<vmem>>, vector<16x128xf32>
    tpu.vector_store %arg6[%c0_10, %c0_11], %20 {strides = array<i32>} : memref<16x128xf32, #tpu.memory_space<vmem>>, vector<16x128xf32>,
    %c0_i32_12 = arith.constant 0 : i32
    %22 = arith.cmpi eq, %arg1, %c0_i32_12 : i32
    %23 = arith.extui %22 : i1 to i32
    %c0_i32_13 = arith.constant 0 : i32
    %24 = arith.cmpi ne, %23, %c0_i32_13 : i32
    scf.if %24 {
      %c0_14 = arith.constant 0 : index
      %c0_15 = arith.constant 0 : index
      %25 = vector.load %arg6[%c0_14, %c0_15] : memref<16x128xf32, #tpu.memory_space<vmem>>, vector<16x128xf32>
      %26 = arith.truncf %25 : vector<16x128xf32> to vector<16x128xbf16>
      %c0_16 = arith.constant 0 : index
      %c0_17 = arith.constant 0 : index
      %27 = vector.load %arg5[%c0_16, %c0_17] : memref<16x128xbf16, #tpu.memory_space<vmem>>, vector<16x128xbf16>
      tpu.vector_store %arg5[%c0_16, %c0_17], %26 {strides = array<i32>} : memref<16x128xbf16, #tpu.memory_space<vmem>>, vector<16x128xbf16>,
    } else {
    }
    return
  }
  func.func @transform_0(%arg0: i32, %arg1: i32) -> (i32, i32) {
    %c0_i32 = arith.constant 0 : i32
    %c0_i32_0 = arith.constant 0 : i32
    return %arg0, %c0_i32 : i32, i32
  }
  func.func @transform_1(%arg0: i32, %arg1: i32) -> (i32, i32) {
    %c0_i32 = arith.constant 0 : i32
    %c0_i32_0 = arith.constant 0 : i32
    return %c0_i32, %arg1 : i32, i32
  }
  func.func @transform_2(%arg0: i32, %arg1: i32) -> (i32, i32) {
    %c0_i32 = arith.constant 0 : i32
    %c0_i32_0 = arith.constant 0 : i32
    return %arg1, %c0_i32 : i32, i32
  }
  func.func @transform_3(%arg0: i32, %arg1: i32) -> (i32, i32) {
    %c0_i32 = arith.constant 0 : i32
    %c0_i32_0 = arith.constant 0 : i32
    return %arg0, %c0_i32 : i32, i32
  }
}

</mosaic_0001>

<bundles_post_ra>
// kernel: tpu_custom_call.1
= control target key start
LH: loop header
LB: loop body
LE: loop exit
PB: predicated region body
PF: predicated region fallthrough
CT: control target
= control target key end

     0   :  { %8 = vsyncpa [#allocation4], 0  ;;  %s660_s0 = inlined_call_operand.hbm [shape: bf16[16,128], index: 0, kind: input, shape index: {}]   ;;  %s661_s1 = inlined_call_operand.hbm [shape: bf16[128,256], index: 1, kind: input, shape index: {}]   ;;  %s662_s2 = inlined_call_operand.hbm [shape: bf16[128,128], index: 2, kind: input, shape index: {}]   ;;  %s663_s3 = inlined_call_operand.hbm [shape: bf16[16,128], index: 3, kind: output, shape index: {}]  }
   0x1   :  { %9 = vsyncpa [#allocation7], 0 }
   0x2   :  { %10 = vsyncpa [#allocation5], 0  ;;  %s572_s12 = smov [#allocation6]   ;;  %s478_s16 = scalar_lea.hbm %s661_s1, 2048 }
   0x3   :  { %s28_s13 = sshll.u32 %s572_s12, 4  ;;  %p479_p0 = scmp.ne.s32.totalorder %s661_s1, %s478_s16  ;;  %s29_s13 = int_to_ptr.vmem [resolvable:$true] %s28_s13 }
   0x4   :  { %p482_p1 = scmp.lt.u32.totalorder %s478_s16, %s661_s1 }
   0x6   :  { %p484_p2 = pnand %p482_p1, %p479_p0 }
   0x8   :  { %487 = shalt.err (!%p484_p2)
}
   0x9   :  { %s488_s21 = scalar_lea.vmem %s29_s13, 2048  ;;  %p493_p4 = scmp.lt.s32.totalorder %s29_s13, %s29_s13 }
   0xa   :  { %p489_p3 = scmp.ne.s32.totalorder %s29_s13, %s488_s21  ;;  %p494_p5 = scmp.lt.s32.totalorder %s488_s21, %s488_s21 }
   0xc   :  { %p495_p6 = por %p494_p5, %p493_p4 }
   0xe   :  { %p496_p7 = pnand %p495_p6, %p489_p3 }
  0x10   :  { %499 = shalt.err (!%p496_p7)
}
  0x11   :  { %s573_s22 = smov 128   ;;  %s574_s23 = smov 8  }
  0x12   :  { %34 = dma.hbm_to_vmem [thread:$0]  %s661_s1, 2048, %s29_s13, [#allocation7], %s573_s22, %s573_s22, %s574_s23  }
  0x13   :  { %s575_s26 = smov [#allocation3]   ;;  %s500_s30 = scalar_lea.hbm %s660_s0, 128 }
  0x14   :  { %s16_s27 = sshll.u32 %s575_s26, 4  ;;  %p501_p8 = scmp.ne.s32.totalorder %s660_s0, %s500_s30  ;;  %s17_s27 = int_to_ptr.vmem [resolvable:$true] %s16_s27 }
  0x15   :  { %p504_p9 = scmp.lt.u32.totalorder %s500_s30, %s660_s0 }
  0x17   :  { %p506_p10 = pnand %p504_p9, %p501_p8 }
  0x19   :  { %509 = shalt.err (!%p506_p10)
}
  0x1a   :  { %s510_s8 = scalar_lea.vmem %s17_s27, 128  ;;  %p515_p12 = scmp.lt.s32.totalorder %s17_s27, %s17_s27 }
  0x1b   :  { %p511_p11 = scmp.ne.s32.totalorder %s17_s27, %s510_s8  ;;  %p516_p13 = scmp.lt.s32.totalorder %s510_s8, %s510_s8 }
  0x1d   :  { %p517_p0 = por %p516_p13, %p515_p12 }
  0x1f   :  { %p518_p1 = pnand %p517_p0, %p511_p11 }
  0x21   :  { %521 = shalt.err (!%p518_p1)
}
  0x22   :  { %s576_s1 = smov 64   ;;  %s577_s9 = smov 4  }
  0x23   :  { %22 = dma.hbm_to_vmem [thread:$0]  %s660_s0, 128, %s17_s27, [#allocation4], %s576_s1, %s576_s1, %s577_s9  }
  0x24   :  { %s578_s12 = smov [#allocation8]   ;;  %s522_s16 = scalar_lea.hbm %s662_s2, 1024 }
  0x25   :  { %s40_s13 = sshll.u32 %s578_s12, 4  ;;  %p523_p2 = scmp.ne.s32.totalorder %s662_s2, %s522_s16  ;;  %s41_s13 = int_to_ptr.vmem [resolvable:$true] %s40_s13 }
  0x26   :  { %p526_p3 = scmp.lt.u32.totalorder %s522_s16, %s662_s2 }
  0x28   :  { %p528_p4 = pnand %p526_p3, %p523_p2 }
  0x2a   :  { %531 = shalt.err (!%p528_p4)
}
  0x2b   :  { %s532_s21 = scalar_lea.vmem %s41_s13, 1024  ;;  %p537_p6 = scmp.lt.s32.totalorder %s41_s13, %s41_s13 }
  0x2c   :  { %p533_p5 = scmp.ne.s32.totalorder %s41_s13, %s532_s21  ;;  %p538_p7 = scmp.lt.s32.totalorder %s532_s21, %s532_s21 }
  0x2e   :  { %p539_p8 = por %p538_p7, %p537_p6 }
  0x30   :  { %p540_p9 = pnand %p539_p8, %p533_p5 }
  0x32   :  { %543 = shalt.err (!%p540_p9)
}
  0x33   :  { %46 = dma.hbm_to_vmem [thread:$0]  %s662_s2, 1024, %s41_s13, [#allocation7], %s576_s1, %s576_s1, %s577_s9  }
  0x34   :  { %566 = dma.done.wait [#allocation4], 128  }
  0x35   :  { %567 = vsyncadd [#allocation4], 4294967168 }
  0x36   :  { %568 = dma.done.wait [#allocation7], 3072  }
  0x37   :  { %569 = vsyncadd [#allocation7], 4294964224  ;;  %v579_v0 = vmov 0   ;;  %v441_v1 = vld [vmem:[#allocation6 + $0x4] ss:$8 sps:$4 sm:$0xff]   ;;  %v465_v17 = vld [vmem:[#allocation3] sm:$0xff]  }
  0x38   :  { %200 = vmatprep.mubr.bf16.mxu0 %v579_v0  ;;  %v443_v2 = vld [vmem:[#allocation6] ss:$8 sps:$4 sm:$0xff]   ;;  %168 = vmatprep.subr.bf16.mxu0 %v441_v1  ;;  %v444_v3 = vld [vmem:[#allocation6 + $0x14] ss:$8 sps:$4 sm:$0xff]   ;;  %v446_v4 = vld [vmem:[#allocation6 + $0x10] ss:$8 sps:$4 sm:$0xff]  }
  0x39   :  { %169 = vmatpush1.bf16.msra.mxu0 %v443_v2  ;;  %v447_v5 = vld [vmem:[#allocation6 + $0x24] ss:$8 sps:$4 sm:$0xff]   ;;  %v449_v6 = vld [vmem:[#allocation6 + $0x20] ss:$8 sps:$4 sm:$0xff]   ;;  %v450_v7 = vld [vmem:[#allocation6 + $0x34] ss:$8 sps:$4 sm:$0xff]  }
  0x3a   :  { %170 = vmatprep.subr.bf16.mxu0 %v444_v3  ;;  %v452_v8 = vld [vmem:[#allocation6 + $0x30] ss:$8 sps:$4 sm:$0xff]   ;;  %v453_v9 = vld [vmem:[#allocation6 + $0x44] ss:$8 sps:$4 sm:$0xff]   ;;  %v455_v10 = vld [vmem:[#allocation6 + $0x40] ss:$8 sps:$4 sm:$0xff]  }
  0x3b   :  { %v456_v11 = vld [vmem:[#allocation6 + $0x54] ss:$8 sps:$4 sm:$0xff]   ;;  %v458_v12 = vld [vmem:[#allocation6 + $0x50] ss:$8 sps:$4 sm:$0xff]   ;;  %v459_v13 = vld [vmem:[#allocation6 + $0x64] ss:$8 sps:$4 sm:$0xff]  }
  0x3c   :  { %v461_v14 = vld [vmem:[#allocation6 + $0x60] ss:$8 sps:$4 sm:$0xff]   ;;  %v462_v15 = vld [vmem:[#allocation6 + $0x74] ss:$8 sps:$4 sm:$0xff]   ;;  %v464_v16 = vld [vmem:[#allocation6 + $0x70] ss:$8 sps:$4 sm:$0xff]  }
  0x3d   :  { %171 = vmatpush1.bf16.msra.mxu0 %v446_v4  ;;  %v466_v18 = vld [vmem:[#allocation8] sm:$0xff]   ;;  %v580_v19 = vmov 0.0   ;;  %v467_v20 = vld [vmem:[#allocation8 + $0x8] sm:$0xff]   ;;  %v468_v21 = vld [vmem:[#allocation8 + $0x10] sm:$0xff]   ;;  %vm581_vm0 = vmmov 0   ;;  %s582_s2 = smov [#allocation9]  }
  0x3e   :  { %172 = vmatprep.subr.bf16.mxu0 %v447_v5  ;;  %410 = vmatprep.subr.bf16.mxu1 %v580_v19  ;;  %v469_v22 = vld [vmem:[#allocation8 + $0x18] sm:$0xff]   ;;  %v470_v23 = vld [vmem:[#allocation8 + $0x20] sm:$0xff]   ;;  %v471_v24 = vld [vmem:[#allocation8 + $0x28] sm:$0xff]   ;;  %s353_s23 = sshll.u32 %s582_s2, 4  ;;  %s354_s23 = int_to_ptr.vmem [resolvable:$true] %s353_s23 }
  0x3f   :  { %411 = vmatpush3.bf16.msra.mxu1 %v466_v18  ;;  %v472_v25 = vld [vmem:[#allocation8 + $0x30] sm:$0xff]   ;;  %v473_v26 = vld [vmem:[#allocation8 + $0x38] sm:$0xff]   ;;  %426 = vmatprep.mubr.msk.bf16.mxu1 %vm581_vm0, %v580_v19  ;;  %s544_s24 = scalar_lea.vmem %s354_s23, 128  ;;  %p549_p11 = scmp.lt.s32.totalorder %s354_s23, %s354_s23 }
  0x40   :  { %412 = vmatprep.subr.bf16.mxu1 %v580_v19  ;;  %p545_p10 = scmp.ne.s32.totalorder %s354_s23, %s544_s24  ;;  %p550_p12 = scmp.lt.s32.totalorder %s544_s24, %s544_s24 }
  0x41   :  { %173 = vmatpush1.bf16.msra.mxu0 %v449_v6 }
  0x42   :  { %174 = vmatprep.subr.bf16.mxu0 %v450_v7  ;;  %p551_p13 = por %p550_p12, %p549_p11 }
  0x43   :  { %413 = vmatpush3.bf16.msra.mxu1 %v467_v20 }
  0x44   :  { %414 = vmatprep.subr.bf16.mxu1 %v580_v19  ;;  %p552_p0 = pnand %p551_p13, %p545_p10 }
  0x45   :  { %175 = vmatpush1.bf16.msra.mxu0 %v452_v8 }
  0x46   :  { %176 = vmatprep.subr.bf16.mxu0 %v453_v9 }
  0x47   :  { %415 = vmatpush3.bf16.msra.mxu1 %v468_v21 }
  0x48   :  { %416 = vmatprep.subr.bf16.mxu1 %v580_v19 }
  0x49   :  { %177 = vmatpush1.bf16.msra.mxu0 %v455_v10 }
  0x4a   :  { %178 = vmatprep.subr.bf16.mxu0 %v456_v11 }
  0x4b   :  { %417 = vmatpush3.bf16.msra.mxu1 %v469_v22 }
  0x4c   :  { %418 = vmatprep.subr.bf16.mxu1 %v580_v19 }
  0x4d   :  { %179 = vmatpush1.bf16.msra.mxu0 %v458_v12 }
  0x4e   :  { %180 = vmatprep.subr.bf16.mxu0 %v459_v13 }
  0x4f   :  { %419 = vmatpush3.bf16.msra.mxu1 %v470_v23 }
  0x50   :  { %420 = vmatprep.subr.bf16.mxu1 %v580_v19 }
  0x51   :  { %181 = vmatpush1.bf16.msra.mxu0 %v461_v14 }
  0x52   :  { %182 = vmatprep.subr.bf16.mxu0 %v462_v15 }
  0x53   :  { %421 = vmatpush3.bf16.msra.mxu1 %v471_v24 }
  0x54   :  { %422 = vmatprep.subr.bf16.mxu1 %v580_v19 }
  0x55   :  { %183 = vmatpush1.bf16.msra.mxu0 %v464_v16 }
  0x57   :  { %423 = vmatpush3.bf16.msra.mxu1 %v472_v25 }
  0x58   :  { %201 = vmatmul.mubr.bf16.vlgmr.msra.gmra.mrb[0].mxu0 %v465_v17  ;;  %424 = vmatprep.subr.bf16.mxu1 %v580_v19 }
  0x5b   :  { %425 = vmatpush3.bf16.msra.mxu1 %v473_v26 }
 0x12b   :  { %v202_v27 = vpop.f32.mrb[0].mxu0 }
 0x12c   :  { %v204_v28 = vpop.f32.mrb[1].mxu0 }
 0x12d   :  { %v206_v29 = vpop.f32.mrb[2].mxu0 }
 0x12e   :  { %v211_v30 = vpack.c.bf16 %v206_v29, %v202_v27  ;;  %v208_v31 = vpop.f32.mrb[3].mxu0 }
 0x12f   :  { %v212_v32 = vpack.c.bf16 %v208_v31, %v204_v28 }
 0x130   :  { %v383_v33 = vmul.bf16 3216621497, %v211_v30 }
 0x132   :  { %474 = vpow.bf16 %v383_v33 }
 0x13d   :  { %v475_v34 = vpop.eup %474 }
 0x13e   :  { %v217_v35 = vadd.bf16 1065369472, %v475_v34 }
 0x140   :  { %476 = vrcp.bf16 %v217_v35 }
 0x14b   :  { %v477_v36 = vpop.eup %476 }
 0x14c   :  { %v219_v37 = vmul.bf16 1065369472, %v477_v36 }
 0x14e   :  { %v220_v38 = vmul.bf16 %v219_v37, %v211_v30 }
 0x150   :  { %v221_v39 = vmul.bf16 %v220_v38, %v212_v32 }
 0x152   :  { %427 = vmatmul.mubr.bf16.vlgmr.msra.gmra.mrb[0].mxu1 %v221_v39 }
 0x225   :  { %v322_v40 = vpop.f32.mrb[0].mxu1 }
 0x226   :  { %v428_v41 = vpop.f32.mrb[1].mxu1 }
 0x227   :  { %v325_v42 = vpop.f32.mrb[2].mxu1 }
 0x228   :  { %v399_v43 = vpack.c.bf16 %v325_v42, %v322_v40  ;;  %v429_v44 = vpop.f32.mrb[3].mxu1 }
 0x22a   :  { %400 = vst [vmem:[#allocation9] sm:$0xff] %v399_v43  }
 0x22b   :  { %555 = shalt.err (!%p552_p0)
}
 0x22c   :  { %s556_s27 = scalar_lea.hbm %s663_s3, 128 }
 0x22d   :  { %p557_p1 = scmp.ne.s32.totalorder %s663_s3, %s556_s27  ;;  %p560_p2 = scmp.lt.u32.totalorder %s556_s27, %s663_s3 }
 0x22f   :  { %p562_p3 = pnand %p560_p2, %p557_p1 }
 0x231   :  { %565 = shalt.err (!%p562_p3)
}
 0x232   :  { %359 = dma.vmem_to_hbm [thread:$0]  %s354_s23, 128, %s663_s3, [#allocation5], %s576_s1, %s576_s1, %s577_s9  }
 0x233   :  { %570 = dma.done.wait [#allocation5], 128  }
 0x234   :  { %571 = vsyncadd [#allocation5], 4294967168 }
 0x235   :  { %363 = vsyncpa [#allocation4], 1 }
 0x236   :  { %364 = vsyncpa [#allocation7], 1 }
 0x237   :  { %365 = vsyncpa [#allocation5], 1 }

</bundles_post_ra>
